<compile_context>
chip_gen: v7x
topology: tpu7x:2x2x1
jax: 0.10.0
libtpu: 0.0.40
codegen_flags: <defaults>
</compile_context>

<pallas_src>
import functools

import jax
import jax.numpy as jnp
from jax.experimental import pallas as pl
from jax.experimental.pallas import tpu as pltpu


def _dropout_keep_mask(shape, seed_i32, p):
    """Exact, stateless keep-mask: splitmix32-style hash of (seed, flat index).

    Uses only plain jnp uint32 ops so it lowers on Mosaic and in interpret mode,
    and can be replayed bit-exactly on the host for verification.
    """
    rows = jax.lax.broadcasted_iota(jnp.int32, shape, 0).astype(jnp.uint32)
    cols = jax.lax.broadcasted_iota(jnp.int32, shape, 1).astype(jnp.uint32)
    idx = rows * jnp.uint32(shape[1]) + cols

    s = seed_i32.astype(jnp.uint32)
    x = idx ^ (s * jnp.uint32(0x9E3779B9) + jnp.uint32(0x85EBCA6B))
    # splitmix32 finalizer (modular uint32 arithmetic).
    x = (x ^ (x >> 16)) * jnp.uint32(0x7FEB352D)
    x = (x ^ (x >> 15)) * jnp.uint32(0x846CA68B)
    x = x ^ (x >> 16)

    # Exact integer threshold: keep with probability (1 - p).
    thr = min(int(round(p * 4294967296.0)), 4294967295)
    return x >= jnp.uint32(thr)


def _c1_kernel(seed_ref, x_ref, params_ref, o_ref, *, n_features, p):
    F = n_features
    x = x_ref[...]

    # Mask depends only on (shape, seed): generate it before the first dot so the
    # VPU hash work hides under the MXU result-FIFO latency.
    apply_dropout = p > 0.0
    if apply_dropout:
        keep = _dropout_keep_mask(x.shape, seed_ref[0], p)
        scale = jnp.float32(1.0 / (1.0 - p))

    # Static views into the packed parameter slab (one DMA for all params).
    w1 = params_ref[0:F, :]
    b1 = params_ref[F:F + 1, :]
    w2 = params_ref[F + 1:2 * F + 1, :]
    b2 = params_ref[2 * F + 1:2 * F + 2, :]

    h = jnp.dot(x, w1, preferred_element_type=jnp.float32) + b1
    if apply_dropout:
        h = jnp.where(keep, h * scale, jnp.zeros_like(h))
    y = jnp.dot(h, w2, preferred_element_type=jnp.float32) + b2
    o_ref[...] = y.astype(o_ref.dtype)


def c1_forward(x, w1, b1, w2, b2, seed=0, *, training=True, p=0.5):
    """x: (B, F) f32.  w1/w2: (F, F) stored as [in, out].  b1/b2: (F,)."""
    if not (0.0 <= p < 1.0):
        raise ValueError("dropout probability p must be in [0, 1)")
    B, F = x.shape

    if not training:
        # Eval-mode dropout is the identity: fold the two linears and let XLA fuse it
        # (a custom kernel only adds launch overhead for a 10-wide GEMM).
        w_fused = w1 @ w2
        b_fused = b1.reshape(1, F) @ w2 + b2.reshape(1, F)
        return x @ w_fused + b_fused

    # Pack all parameters into one contiguous (2F+2, F) slab -> single DMA.
    params = jnp.concatenate(
        [w1, b1.reshape(1, F), w2, b2.reshape(1, F)], axis=0
    ).astype(jnp.float32)
    seed_arr = jnp.asarray([seed], dtype=jnp.int32)

    kernel = functools.partial(_c1_kernel, n_features=F, p=p)
    return pl.pallas_call(
        kernel,
        out_shape=jax.ShapeDtypeStruct((B, F), x.dtype),
        in_specs=[
            pl.BlockSpec(memory_space=pltpu.MemorySpace.SMEM),  # seed scalar
            pl.BlockSpec((B, F), lambda: (0, 0)),               # x
            pl.BlockSpec((2 * F + 2, F), lambda: (0, 0)),       # packed params
        ],
        out_specs=pl.BlockSpec((B, F), lambda: (0, 0)),
    )(seed_arr, x, params)
    # TODO(synk): if the deployment batch grows (>~512 rows), add a 1-D row grid with
    # lane-aligned tiles and dimension_semantics=("parallel",) so v7x's 2 TCs share it.


def _reference_forward(x, w1, b1, w2, b2, seed, *, training, p):
    """Pure-JAX reference replaying the exact same integer-hash dropout mask."""
    h = x @ w1 + b1.reshape(1, -1)
    if training and p > 0.0:
        keep = _dropout_keep_mask(h.shape, jnp.int32(seed), p)
        h = jnp.where(keep, h * (1.0 / (1.0 - p)), jnp.zeros_like(h))
    return h @ w2 + b2.reshape(1, -1)


if __name__ == "__main__":
    key = jax.random.PRNGKey(0)
    k_x, k_w1, k_b1, k_w2, k_b2 = jax.random.split(key, 5)

    B, F = 8, 10
    x = jax.random.normal(k_x, (B, F), dtype=jnp.float32)

    # Deterministic parameter init, mimicking nn.Linear's U(-1/sqrt(in), 1/sqrt(in)).
    bound = 1.0 / jnp.sqrt(jnp.float32(F))
    # PyTorch stores W as (out, in); we store the transpose [in, out] for x @ W.
    w1_pt = jax.random.uniform(k_w1, (F, F), jnp.float32, -bound, bound)
    b1 = jax.random.uniform(k_b1, (F,), jnp.float32, -bound, bound)
    w2_pt = jax.random.uniform(k_w2, (F, F), jnp.float32, -bound, bound)
    b2 = jax.random.uniform(k_b2, (F,), jnp.float32, -bound, bound)
    w1 = w1_pt.T
    w2 = w2_pt.T

    # 1) Training-mode forward (dropout active, deterministic given the seed).
    out_train = jax.block_until_ready(
        c1_forward(x, w1, b1, w2, b2, seed=123, training=True, p=0.5))
    ref_train = _reference_forward(x, w1, b1, w2, b2, 123, training=True, p=0.5)
    assert out_train.shape == (B, F)
    assert jnp.allclose(out_train, ref_train, atol=1e-5, rtol=1e-5)

    # 2) Kernel path with dropout disabled (p=0) must match the plain two-linear chain.
    out_p0 = jax.block_until_ready(
        c1_forward(x, w1, b1, w2, b2, seed=0, training=True, p=0.0))
    ref_linear = (x @ w1 + b1.reshape(1, F)) @ w2 + b2.reshape(1, F)
    assert jnp.allclose(out_p0, ref_linear, atol=1e-5, rtol=1e-5)

    # 3) Eval mode skips the kernel (fused single GEMM in XLA); same math.
    out_eval = jax.block_until_ready(
        c1_forward(x, w1, b1, w2, b2, training=False))
    assert jnp.allclose(out_eval, ref_linear, atol=1e-4, rtol=1e-4)

    print("KERNEL_OK")
</pallas_src>

<mosaic_0001>
module attributes {stable_mosaic.version = 11 : i64} {
  func.func @_c1_kernel(%arg0: memref<1xi32, #tpu.memory_space<smem>>, %arg1: memref<8x10xf32, #tpu.memory_space<vmem>>, %arg2: memref<22x10xf32, #tpu.memory_space<vmem>>, %arg3: memref<8x10xf32, #tpu.memory_space<vmem>>) attributes {dimension_semantics = [], scalar_prefetch = 0 : i64, scratch_operands = 0 : i64, tpu.core_type = #tpu.core_type<tc>} {
    %c0 = arith.constant 0 : index
    %c0_0 = arith.constant 0 : index
    %0 = vector.load %arg1[%c0, %c0_0] : memref<8x10xf32, #tpu.memory_space<vmem>>, vector<8x10xf32>
    %c0_1 = arith.constant 0 : index
    %1 = memref.load %arg0[%c0_1] : memref<1xi32, #tpu.memory_space<smem>>
    %2 = tpu.iota {dimensions = array<i32: 0>} : vector<8x10xi32>
    %3 = tpu.iota {dimensions = array<i32: 1>} : vector<8x10xi32>
    %c10_i32 = arith.constant 10 : i32
    %4 = vector.broadcast %c10_i32 : i32 to vector<8x10xi32>
    %5 = arith.muli %2, %4 : vector<8x10xi32>
    %6 = arith.addi %5, %3 : vector<8x10xi32>
    %c-1640531527_i32 = arith.constant -1640531527 : i32
    %7 = arith.muli %1, %c-1640531527_i32 : i32
    %c-2048144789_i32 = arith.constant -2048144789 : i32
    %8 = arith.addi %7, %c-2048144789_i32 : i32
    %9 = vector.broadcast %8 : i32 to vector<8x10xi32>
    %10 = arith.xori %6, %9 : vector<8x10xi32>
    %c16_i32 = arith.constant 16 : i32
    %11 = vector.broadcast %c16_i32 : i32 to vector<8x10xi32>
    %12 = arith.shrui %10, %11 : vector<8x10xi32>
    %13 = arith.xori %10, %12 : vector<8x10xi32>
    %c2146121005_i32 = arith.constant 2146121005 : i32
    %14 = vector.broadcast %c2146121005_i32 : i32 to vector<8x10xi32>
    %15 = arith.muli %13, %14 : vector<8x10xi32>
    %c15_i32 = arith.constant 15 : i32
    %16 = vector.broadcast %c15_i32 : i32 to vector<8x10xi32>
    %17 = arith.shrui %15, %16 : vector<8x10xi32>
    %18 = arith.xori %15, %17 : vector<8x10xi32>
    %c-2073254261_i32 = arith.constant -2073254261 : i32
    %19 = vector.broadcast %c-2073254261_i32 : i32 to vector<8x10xi32>
    %20 = arith.muli %18, %19 : vector<8x10xi32>
    %c16_i32_2 = arith.constant 16 : i32
    %21 = vector.broadcast %c16_i32_2 : i32 to vector<8x10xi32>
    %22 = arith.shrui %20, %21 : vector<8x10xi32>
    %23 = arith.xori %20, %22 : vector<8x10xi32>
    %c-2147483648_i32 = arith.constant -2147483648 : i32
    %24 = vector.broadcast %c-2147483648_i32 : i32 to vector<8x10xi32>
    %25 = arith.cmpi uge, %23, %24 : vector<8x10xi32>
    %c0_3 = arith.constant 0 : index
    %c0_4 = arith.constant 0 : index
    %26 = vector.load %arg2[%c0_3, %c0_4] : memref<22x10xf32, #tpu.memory_space<vmem>>, vector<10x10xf32>
    %c10 = arith.constant 10 : index
    %c0_5 = arith.constant 0 : index
    %27 = vector.load %arg2[%c10, %c0_5] : memref<22x10xf32, #tpu.memory_space<vmem>>, vector<1x10xf32>
    %c11 = arith.constant 11 : index
    %c0_6 = arith.constant 0 : index
    %28 = vector.load %arg2[%c11, %c0_6] : memref<22x10xf32, #tpu.memory_space<vmem>>, vector<10x10xf32>
    %c21 = arith.constant 21 : index
    %c0_7 = arith.constant 0 : index
    %29 = vector.load %arg2[%c21, %c0_7] : memref<22x10xf32, #tpu.memory_space<vmem>>, vector<1x10xf32>
    %cst = arith.constant dense<0.000000e+00> : vector<8x10xf32>
    %30 = tpu.matmul %0, %26, %cst {dimension_numbers = #tpu.dot_dimension_numbers<[1], [0], [0], [1], [0, 0, 1, 1], [], []>} : vector<8x10xf32>, vector<10x10xf32>, vector<8x10xf32> -> vector<8x10xf32>
    %31 = vector.broadcast %27 : vector<1x10xf32> to vector<8x10xf32>
    %32 = arith.addf %30, %31 : vector<8x10xf32>
    %cst_8 = arith.constant 2.000000e+00 : f32
    %33 = vector.broadcast %cst_8 : f32 to vector<8x10xf32>
    %34 = arith.mulf %32, %33 : vector<8x10xf32>
    %cst_9 = arith.constant 0.000000e+00 : f32
    %35 = vector.broadcast %cst_9 : f32 to vector<8x10xf32>
    %36 = arith.select %25, %34, %35 : vector<8x10xi1>, vector<8x10xf32>
    %cst_10 = arith.constant dense<0.000000e+00> : vector<8x10xf32>
    %37 = tpu.matmul %36, %28, %cst_10 {dimension_numbers = #tpu.dot_dimension_numbers<[1], [0], [0], [1], [0, 0, 1, 1], [], []>} : vector<8x10xf32>, vector<10x10xf32>, vector<8x10xf32> -> vector<8x10xf32>
    %38 = vector.broadcast %29 : vector<1x10xf32> to vector<8x10xf32>
    %39 = arith.addf %37, %38 : vector<8x10xf32>
    %c0_11 = arith.constant 0 : index
    %c0_12 = arith.constant 0 : index
    %40 = vector.load %arg3[%c0_11, %c0_12] : memref<8x10xf32, #tpu.memory_space<vmem>>, vector<8x10xf32>
    tpu.vector_store %arg3[%c0_11, %c0_12], %39 {strides = array<i32>} : memref<8x10xf32, #tpu.memory_space<vmem>>, vector<8x10xf32>,
    return
  }
}

</mosaic_0001>

<bundles_post_ra>
// kernel: tpu_custom_call.1
= control target key start
LH: loop header
LB: loop body
LE: loop exit
PB: predicated region body
PF: predicated region fallthrough
CT: control target
= control target key end

     0   :  { %vm51_vm0 = vcmask 1041408   ;;  %v285_v2 = vmov 0.0|0.0   ;;  %vm286_vm1 = vmmov 1   ;;  %vm287_vm3 = vmmov 0   ;;  %s349_s0 = inlined_call_operand.<no memory space> [shape: s32[1], index: 0, kind: input, shape index: {}]   ;;  %s350_s1 = inlined_call_operand.vmem [shape: f32[8,10], index: 1, kind: input, shape index: {}]   ;;  %s351_s2 = inlined_call_operand.vmem [shape: f32[22,10], index: 2, kind: input, shape index: {}]   ;;  %s352_s3 = inlined_call_operand.hbm [shape: f32[8,10], index: 3, kind: output, shape index: {}]  }
   0x1   :  { %v37_v0 = vld [vmem:[%s351_s2] sm:$0xff]  ;;  %v38_v1 = vld [vmem:[%s351_s2 + $0x8] sm:$0x3]  ;;  %248 = vmatprep.subr.bf16.mxu0 %v285_v2  ;;  %vm250_vm2 = vmpackc.low %vm51_vm0, %vm286_vm1  ;;  %252 = vmatprep.subr.bf16.mxu1 %v285_v2  ;;  %v288_v4 = vmov 0.0  }
   0x2   :  { %v249_v3 = vpack.c.bf16 %v38_v1, %v37_v0  ;;  %238 = vmatprep.mubr.msk.f32.mxu0 %vm287_vm3, %v288_v4  ;;  %245 = vmatprep.mubr.msk.f32.mxu1 %vm287_vm3, %v288_v4 }
   0x3   :  { %9 = vsyncpa [#allocation4], 0  ;;  %v16_v5 = vld [vmem:[%s350_s1] sm:$0xff]  ;;  %vm47_vm4 = vcmask 80896   ;;  %v40_v6 = vld [vmem:[%s351_s2 + $0xb] sm:$0xff]  ;;  %v18_v9 = vlaneseq  ;;  %s289_s28 = smov [#allocation3]  }
   0x4   :  { %251 = vmatpush3.bf16.msk.msra.mxu0 %vm250_vm2, %v249_v3  ;;  %v41_v7 = vld [vmem:[%s351_s2 + $0x13] sm:$0x3]  ;;  %s24_s24 = smul.u32 2654435769, %s349_s0  ;;  %v222_v24 = vld [vmem:[%s351_s2 + $0xa] ss:$0 sm:$0xff] }
   0x5   :  { %v253_v8 = vpack.c.bf16 %v41_v7, %v40_v6  ;;  %v19_v10 = vshrl.u32 %v18_v9, 7  ;;  %v21_v11 = vand.u32 127, %v18_v9  ;;  %v225_v30 = vld [vmem:[%s351_s2 + $0x15] ss:$0 sm:$0xff]  ;;  %s214_s29 = sshll.u32 %s289_s28, 4  ;;  %s215_s29 = int_to_ptr.vmem [resolvable:$true] %s214_s29 }
   0x6   :  { %s25_s1 = sadd.s32 2246822507, %s24_s24  ;;  %s261_s30 = scalar_lea.vmem %s215_s29, 128 }
   0x7   :  { %239 = vmatmul.mubr.msk.f32.vlgmr.msra.gmra.mrb[0].mxu0 %vm47_vm4, %v16_v5  ;;  %255 = vmatpush3.bf16.msk.msra.mxu1 %vm250_vm2, %v253_v8  ;;  %v22_v12 = vmul.u32 10, %v19_v10  ;;  %v26_v14 = vstv %s25_s1  ;;  %p262_p0 = scmp.ne.s32.totalorder %s215_s29, %s261_s30  ;;  %p266_p1 = scmp.lt.s32.totalorder %s215_s29, %s215_s29 }
   0x8   :  { %p267_p2 = scmp.lt.s32.totalorder %s261_s30, %s261_s30 }
   0x9   :  { %v23_v13 = vadd.s32 %v22_v12, %v21_v11 }
   0xa   :  { %p268_p3 = por %p267_p2, %p266_p1 }
   0xb   :  { %v27_v15 = vxor.u32 %v26_v14, %v23_v13 }
   0xc   :  { %p269_p4 = pnand %p268_p3, %p262_p0 }
   0xd   :  { %v28_v16 = vshrl.u32 %v27_v15, 16 }
   0xf   :  { %v29_v17 = vxor.u32 %v28_v16, %v27_v15 }
  0x11   :  { %v30_v18 = vmul.u32 2146121005, %v29_v17 }
  0x13   :  { %v31_v19 = vshrl.u32 %v30_v18, 15 }
  0x15   :  { %v32_v20 = vxor.u32 %v31_v19, %v30_v18 }
  0x17   :  { %v33_v21 = vmul.u32 2221713035, %v32_v20 }
  0x19   :  { %v34_v22 = vshrl.u32 %v33_v21, 16 }
  0x1b   :  { %v35_v23 = vxor.u32 %v34_v22, %v33_v21 }
  0x1d   :  { %vm36_vm5 = vcmp.ge.u32.totalorder %v35_v23, 2147483648 }
  0xda   :  { %v121_v25 = vpop.f32.mrb[0].mxu0 }
  0xdb   :  { %v122_v26 = vadd.f32 %v222_v24, %v121_v25  ;;  %v240_v27 = vpop.f32.mrb[1].mxu0 }
  0xdd   :  { %v125_v28 = vmul.f32 2.0, %v122_v26 }
  0xdf   :  { %v126_v29 = vsel %vm36_vm5, %v125_v28, 0.0 }
  0xe0   :  { %246 = vmatmul.mubr.msk.f32.vlgmr.msra.gmra.mrb[0].mxu1 %vm47_vm4, %v126_v29 }
 0x1b3   :  { %v203_v31 = vpop.f32.mrb[0].mxu1 }
 0x1b4   :  { %v204_v32 = vadd.f32 %v225_v30, %v203_v31  ;;  %v247_v33 = vpop.f32.mrb[1].mxu1 }
 0x1b6   :  { %207 = vst.msk [vmem:[#allocation3] sm:$0xff] %vm47_vm4, %v204_v32 }
 0x1b7   :  { %272 = shalt.err (!%p269_p4)
}
 0x1b8   :  { %s273_s6 = scalar_lea.hbm %s352_s3, 128 }
 0x1b9   :  { %p274_p5 = scmp.ne.s32.totalorder %s352_s3, %s273_s6  ;;  %p277_p6 = scmp.lt.u32.totalorder %s273_s6, %s352_s3 }
 0x1bb   :  { %p279_p7 = pnand %p277_p6, %p274_p5 }
 0x1bd   :  { %282 = shalt.err (!%p279_p7)
}
 0x1be   :  { %217 = dma.vmem_to_hbm [thread:$0]  %s215_s29, 128, %s352_s3, [#allocation4]  }
 0x1bf   :  { %283 = dma.done.wait [#allocation4], 128  }
 0x1c0   :  { %284 = vsyncadd [#allocation4], 4294967168 }
 0x1c1   :  { %221 = vsyncpa [#allocation4], 1 }

</bundles_post_ra>
